<compile_context>
chip_gen: v7x
topology: tpu7x:2x2x1
jax: 0.10.0
libtpu: 0.0.40
codegen_flags: <defaults>
</compile_context>

<pallas_src>
import jax
import jax.numpy as jnp
from jax.experimental import pallas as pl
from jax.experimental.pallas import tpu as pltpu

KH = KW = 3  # 3x3 kernel, padding=1


def _round_up(v, m):
    return -(-v // m) * m


def _banded_weights(w, W, C, lane):
    """torch OIHW (Cout,Cin,3,3) -> (3, lane, lane) banded matrices, one per kh.

    bands[kh, i*C + a, j*C + b] = w[b, a, kh, kw] with i = j + kw - 1, so
    `row @ bands[kh]` performs the kw sum of the conv for that kh, including
    the W-boundary zero padding (out-of-range blocks are simply absent).
    """
    w_hwio = jnp.transpose(w, (2, 3, 1, 0)).astype(jnp.float32)   # (kh,kw,Cin,Cout)
    # eyes[kw][i, j] = 1  iff  input column i feeds output column j for this kw
    eyes = jnp.stack([jnp.eye(W, k=1 - kw, dtype=jnp.float32) for kw in range(KW)])
    bands = jnp.einsum('kij,hkab->hiajb', eyes, w_hwio)           # (3, W, Cin, W, Cout)
    bands = bands.reshape(KH, W * C, W * C)
    pad = lane - W * C
    return jnp.pad(bands, ((0, 0), (0, pad), (0, pad)))


def _flat_bias(b, W, lane):
    bf = jnp.tile(b.astype(jnp.float32), W)                       # (W*C,)
    return jnp.pad(bf, (0, lane - bf.shape[0])).reshape(1, lane)


def br_forward(x_nchw, w1, b1, w2, b2, *, compute_dtype=jnp.bfloat16,
               target_rows=512):
    """x: (N,C,H,W); w*: (C,C,3,3) torch OIHW; b*: (C,). Returns f32 (N,C,H,W)."""
    N, C, H, W = x_nchw.shape
    WC = W * C
    LANE = _round_up(WC, 128)          # lane-dense last dim (multiple of 128)
    HR = _round_up(H, 8)               # rows per image, sublane-aligned, NO halo rows

    # Images per grid step: fill ~target_rows MXU M-rows, but keep the grid
    # length >= 2 when N >= 2 (v7x megacore + DMA/compute pipelining).
    max_imgs = max(1, target_rows // HR)
    if N >= 2:
        max_imgs = min(max_imgs, max(1, N // 2))
    Nb = max(1, min(max_imgs, N))
    nblk = -(-N // Nb)                 # ceil(N / Nb); remainder block is zero-padded
    NP = nblk * Nb
    R = Nb * HR                        # rows per grid step

    # ---- host-side layout prep (plain XLA glue) ----
    x_nhwc = jnp.transpose(x_nchw, (0, 2, 3, 1)).reshape(N, H, WC)     # (N,H,W*C)
    x_rows = jnp.pad(x_nhwc, ((0, NP - N), (0, HR - H), (0, LANE - WC)))
    x_rows = x_rows.reshape(NP * HR, LANE).astype(jnp.float32)         # f32 residual read

    # Per conv: stack the 3 per-kh banded matrices along K -> (3*LANE, LANE).
    w1b = _banded_weights(w1, W, C, LANE).reshape(KH * LANE, LANE).astype(compute_dtype)
    w2b = _banded_weights(w2, W, C, LANE).reshape(KH * LANE, LANE).astype(compute_dtype)
    b1f = _flat_bias(b1, W, LANE)
    b2f = _flat_bias(b2, W, LANE)

    # ---- kernel ----
    def br_kernel(x_ref, w1_ref, b1_ref, w2_ref, b2_ref, out_ref):
        x = x_ref[...]                                            # (R, LANE) f32
        rows = jax.lax.broadcasted_iota(jnp.int32, (R, 1), 0)
        rmod = rows % HR
        not_first = rmod != 0          # row p-1 lies inside the same image
        not_last = rmod != (H - 1)     # row p+1 lies inside the same image

        def conv3x3(a, w_ref, b_ref):
            # a[p-1], a[p], a[p+1] with zero "halo" at image boundaries; the
            # roll wrap rows are always masked or land on zero pad rows.
            a_dn = jnp.where(not_first, pltpu.roll(a, shift=1, axis=0), 0.0)
            a_up = jnp.where(not_last, pltpu.roll(a, shift=R - 1, axis=0), 0.0)
            lhs = jnp.concatenate([a_dn, a, a_up], axis=1).astype(compute_dtype)
            # Single MXU run: (R, 3*LANE) @ (3*LANE, LANE), f32 accumulation.
            return (jnp.dot(lhs, w_ref[...], preferred_element_type=jnp.float32)
                    + b_ref[...])

        y1 = jnp.maximum(conv3x3(x, w1_ref, b1_ref), 0.0)         # f32
        y2 = conv3x3(y1, w2_ref, b2_ref)                          # f32
        out_ref[...] = (x + y2).astype(out_ref.dtype)             # f32 residual

    wbytes = jnp.dtype(compute_dtype).itemsize
    block_bytes = (4 * R * LANE * 4                    # x + out, double-buffered, f32
                   + 4 * KH * LANE * LANE * wbytes     # two banded weights, double-buffered
                   + 4 * LANE * 4)                     # biases
    vmem_limit = int(min(96 * 2**20, max(32 * 2**20, 2 * block_bytes)))

    out_rows = pl.pallas_call(
        br_kernel,
        out_shape=jax.ShapeDtypeStruct((NP * HR, LANE), jnp.float32),
        grid_spec=pltpu.PrefetchScalarGridSpec(
            num_scalar_prefetch=0,
            grid=(nblk,),
            in_specs=[
                pl.BlockSpec((R, LANE), lambda n: (n, 0)),              # x rows (f32)
                pl.BlockSpec((KH * LANE, LANE), lambda n: (0, 0)),      # conv1 banded W
                pl.BlockSpec((1, LANE), lambda n: (0, 0)),              # conv1 bias
                pl.BlockSpec((KH * LANE, LANE), lambda n: (0, 0)),      # conv2 banded W
                pl.BlockSpec((1, LANE), lambda n: (0, 0)),              # conv2 bias
            ],
            out_specs=pl.BlockSpec((R, LANE), lambda n: (n, 0)),
        ),
        compiler_params=pltpu.CompilerParams(
            dimension_semantics=("parallel",),                          # megacore on v7x
            vmem_limit_bytes=vmem_limit),
    )(x_rows, w1b, b1f, w2b, b2f)

    out = out_rows.reshape(NP, HR, LANE)[:N, :H, :WC].reshape(N, H, W, C)
    return jnp.transpose(out, (0, 3, 1, 2))


def br_reference(x, w1, b1, w2, b2):
    """Plain-JAX reference matching torch semantics (NCHW, OIHW)."""
    dn = ('NCHW', 'OIHW', 'NCHW')
    y = jax.lax.conv_general_dilated(x, w1, (1, 1), ((1, 1), (1, 1)),
                                     dimension_numbers=dn)
    y = jnp.maximum(y + b1[None, :, None, None], 0.0)
    y = jax.lax.conv_general_dilated(y, w2, (1, 1), ((1, 1), (1, 1)),
                                     dimension_numbers=dn)
    y = y + b2[None, :, None, None]
    return x + y


if __name__ == "__main__":
    key = jax.random.PRNGKey(0)
    kx, k1, k2, k3, k4 = jax.random.split(key, 5)

    N, C, H, W = 2, 4, 16, 16
    x = jax.random.normal(kx, (N, C, H, W), jnp.float32)
    w1 = jax.random.normal(k1, (C, C, KH, KW), jnp.float32) * 0.1
    b1 = jax.random.normal(k2, (C,), jnp.float32) * 0.1
    w2 = jax.random.normal(k3, (C, C, KH, KW), jnp.float32) * 0.1
    b2 = jax.random.normal(k4, (C,), jnp.float32) * 0.1

    # Pre-round x / weights to bf16 so the kernel (bf16 MXU operands) and the
    # f32 reference see identical operands; the remaining difference is f32
    # accumulation order + one bf16 rounding of the intermediate activation.
    rnd = lambda a: a.astype(jnp.bfloat16).astype(jnp.float32)
    x, w1, w2 = rnd(x), rnd(w1), rnd(w2)

    out = jax.block_until_ready(br_forward(x, w1, b1, w2, b2))

    ref = br_reference(x, w1, b1, w2, b2)
    max_err = float(jnp.max(jnp.abs(out - ref)))
    assert out.shape == ref.shape
    assert jnp.allclose(out, ref, atol=2e-2, rtol=2e-2), f"max_err={max_err}"

    print("KERNEL_OK")
</pallas_src>

<mosaic_0001>
module attributes {stable_mosaic.version = 11 : i64} {
  func.func @br_kernel(%arg0: i32, %arg1: memref<16x128xf32, #tpu.memory_space<vmem>>, %arg2: memref<384x128xbf16, #tpu.memory_space<vmem>>, %arg3: memref<1x128xf32, #tpu.memory_space<vmem>>, %arg4: memref<384x128xbf16, #tpu.memory_space<vmem>>, %arg5: memref<1x128xf32, #tpu.memory_space<vmem>>, %arg6: memref<16x128xf32, #tpu.memory_space<vmem>>) attributes {dimension_semantics = [#tpu.dimension_semantics<parallel>], iteration_bounds = array<i64: 2>, scalar_prefetch = 0 : i64, scratch_operands = 0 : i64, tpu.core_type = #tpu.core_type<tc>, window_params = [{transform_indices = @transform_0, window_bounds = array<i64: 16, 128>}, {pipeline_mode = #tpu.pipeline_mode<synchronous>, transform_indices = @transform_1, window_bounds = array<i64: 384, 128>}, {pipeline_mode = #tpu.pipeline_mode<synchronous>, transform_indices = @transform_2, window_bounds = array<i64: 1, 128>}, {pipeline_mode = #tpu.pipeline_mode<synchronous>, transform_indices = @transform_3, window_bounds = array<i64: 384, 128>}, {pipeline_mode = #tpu.pipeline_mode<synchronous>, transform_indices = @transform_4, window_bounds = array<i64: 1, 128>}, {transform_indices = @transform_5, window_bounds = array<i64: 16, 128>}]} {
    %c0 = arith.constant 0 : index
    %c0_0 = arith.constant 0 : index
    %0 = vector.load %arg1[%c0, %c0_0] : memref<16x128xf32, #tpu.memory_space<vmem>>, vector<16x128xf32>
    %1 = tpu.iota {dimensions = array<i32: 0>} : vector<16x1xi32>
    %c16_i32 = arith.constant 16 : i32
    %c0_i32 = arith.constant 0 : i32
    %2 = arith.cmpi eq, %c16_i32, %c0_i32 : i32
    %c1_i32 = arith.constant 1 : i32
    %3 = arith.select %2, %c1_i32, %c16_i32 : i32
    %4 = vector.broadcast %3 : i32 to vector<16x1xi32>
    %5 = arith.remsi %1, %4 : vector<16x1xi32>
    %c0_i32_1 = arith.constant 0 : i32
    %6 = vector.broadcast %c0_i32_1 : i32 to vector<16x1xi32>
    %7 = arith.cmpi ne, %5, %6 : vector<16x1xi32>
    %c0_i32_2 = arith.constant 0 : i32
    %8 = vector.broadcast %c0_i32_2 : i32 to vector<16x1xi32>
    %9 = arith.cmpi slt, %5, %8 : vector<16x1xi32>
    %c0_i32_3 = arith.constant 0 : i32
    %10 = arith.cmpi slt, %3, %c0_i32_3 : i32
    %11 = vector.broadcast %10 : i1 to vector<16x1xi1>
    %12 = vector.broadcast %11 : vector<16x1xi1> to vector<16x1xi1>
    %13 = arith.xori %9, %12 : vector<16x1xi1>
    %14 = arith.andi %13, %7 : vector<16x1xi1>
    %15 = vector.broadcast %3 : i32 to vector<16x1xi32>
    %16 = arith.addi %5, %15 : vector<16x1xi32>
    %17 = arith.select %14, %16, %5 : vector<16x1xi1>, vector<16x1xi32>
    %c0_i32_4 = arith.constant 0 : i32
    %18 = vector.broadcast %c0_i32_4 : i32 to vector<16x1xi32>
    %19 = arith.cmpi ne, %17, %18 : vector<16x1xi32>
    %c15_i32 = arith.constant 15 : i32
    %20 = vector.broadcast %c15_i32 : i32 to vector<16x1xi32>
    %21 = arith.cmpi ne, %17, %20 : vector<16x1xi32>
    %c1_i32_5 = arith.constant 1 : i32
    %22 = tpu.dynamic_rotate %0 by %c1_i32_5 dim 0 : vector<16x128xf32>, i32 -> vector<16x128xf32>
    %cst = arith.constant 0.000000e+00 : f32
    %23 = vector.shape_cast %19 : vector<16x1xi1> to vector<16x1xi1>
    %24 = vector.broadcast %23 : vector<16x1xi1> to vector<16x128xi1>
    %25 = vector.broadcast %cst : f32 to vector<16x128xf32>
    %26 = arith.select %24, %22, %25 : vector<16x128xi1>, vector<16x128xf32>
    %c15_i32_6 = arith.constant 15 : i32
    %27 = tpu.dynamic_rotate %0 by %c15_i32_6 dim 0 : vector<16x128xf32>, i32 -> vector<16x128xf32>
    %cst_7 = arith.constant 0.000000e+00 : f32
    %28 = vector.shape_cast %21 : vector<16x1xi1> to vector<16x1xi1>
    %29 = vector.broadcast %28 : vector<16x1xi1> to vector<16x128xi1>
    %30 = vector.broadcast %cst_7 : f32 to vector<16x128xf32>
    %31 = arith.select %29, %27, %30 : vector<16x128xi1>, vector<16x128xf32>
    %32 = tpu.concatenate %26, %0, %31 in 1 : vector<16x128xf32>, vector<16x128xf32>, vector<16x128xf32> -> vector<16x384xf32>
    %33 = arith.truncf %32 : vector<16x384xf32> to vector<16x384xbf16>
    %c0_8 = arith.constant 0 : index
    %c0_9 = arith.constant 0 : index
    %34 = vector.load %arg2[%c0_8, %c0_9] : memref<384x128xbf16, #tpu.memory_space<vmem>>, vector<384x128xbf16>
    %cst_10 = arith.constant dense<0.000000e+00> : vector<16x128xf32>
    %35 = tpu.matmul %33, %34, %cst_10 {dimension_numbers = #tpu.dot_dimension_numbers<[1], [0], [0], [1], [0, 0, 1, 1], [], []>} : vector<16x384xbf16>, vector<384x128xbf16>, vector<16x128xf32> -> vector<16x128xf32>
    %c0_11 = arith.constant 0 : index
    %c0_12 = arith.constant 0 : index
    %36 = vector.load %arg3[%c0_11, %c0_12] : memref<1x128xf32, #tpu.memory_space<vmem>>, vector<1x128xf32>
    %37 = vector.broadcast %36 : vector<1x128xf32> to vector<16x128xf32>
    %38 = arith.addf %35, %37 : vector<16x128xf32>
    %cst_13 = arith.constant 0.000000e+00 : f32
    %39 = vector.broadcast %cst_13 : f32 to vector<16x128xf32>
    %40 = arith.maximumf %38, %39 : vector<16x128xf32>
    %c1_i32_14 = arith.constant 1 : i32
    %41 = tpu.dynamic_rotate %40 by %c1_i32_14 dim 0 : vector<16x128xf32>, i32 -> vector<16x128xf32>
    %cst_15 = arith.constant 0.000000e+00 : f32
    %42 = vector.shape_cast %19 : vector<16x1xi1> to vector<16x1xi1>
    %43 = vector.broadcast %42 : vector<16x1xi1> to vector<16x128xi1>
    %44 = vector.broadcast %cst_15 : f32 to vector<16x128xf32>
    %45 = arith.select %43, %41, %44 : vector<16x128xi1>, vector<16x128xf32>
    %c15_i32_16 = arith.constant 15 : i32
    %46 = tpu.dynamic_rotate %40 by %c15_i32_16 dim 0 : vector<16x128xf32>, i32 -> vector<16x128xf32>
    %cst_17 = arith.constant 0.000000e+00 : f32
    %47 = vector.shape_cast %21 : vector<16x1xi1> to vector<16x1xi1>
    %48 = vector.broadcast %47 : vector<16x1xi1> to vector<16x128xi1>
    %49 = vector.broadcast %cst_17 : f32 to vector<16x128xf32>
    %50 = arith.select %48, %46, %49 : vector<16x128xi1>, vector<16x128xf32>
    %51 = tpu.concatenate %45, %40, %50 in 1 : vector<16x128xf32>, vector<16x128xf32>, vector<16x128xf32> -> vector<16x384xf32>
    %52 = arith.truncf %51 : vector<16x384xf32> to vector<16x384xbf16>
    %c0_18 = arith.constant 0 : index
    %c0_19 = arith.constant 0 : index
    %53 = vector.load %arg4[%c0_18, %c0_19] : memref<384x128xbf16, #tpu.memory_space<vmem>>, vector<384x128xbf16>
    %cst_20 = arith.constant dense<0.000000e+00> : vector<16x128xf32>
    %54 = tpu.matmul %52, %53, %cst_20 {dimension_numbers = #tpu.dot_dimension_numbers<[1], [0], [0], [1], [0, 0, 1, 1], [], []>} : vector<16x384xbf16>, vector<384x128xbf16>, vector<16x128xf32> -> vector<16x128xf32>
    %c0_21 = arith.constant 0 : index
    %c0_22 = arith.constant 0 : index
    %55 = vector.load %arg5[%c0_21, %c0_22] : memref<1x128xf32, #tpu.memory_space<vmem>>, vector<1x128xf32>
    %56 = vector.broadcast %55 : vector<1x128xf32> to vector<16x128xf32>
    %57 = arith.addf %54, %56 : vector<16x128xf32>
    %58 = arith.addf %0, %57 : vector<16x128xf32>
    %c0_23 = arith.constant 0 : index
    %c0_24 = arith.constant 0 : index
    %59 = vector.load %arg6[%c0_23, %c0_24] : memref<16x128xf32, #tpu.memory_space<vmem>>, vector<16x128xf32>
    tpu.vector_store %arg6[%c0_23, %c0_24], %58 {strides = array<i32>} : memref<16x128xf32, #tpu.memory_space<vmem>>, vector<16x128xf32>,
    return
  }
  func.func @transform_0(%arg0: i32) -> (i32, i32) {
    %c0_i32 = arith.constant 0 : i32
    %c0_i32_0 = arith.constant 0 : i32
    return %arg0, %c0_i32 : i32, i32
  }
  func.func @transform_1(%arg0: i32) -> (i32, i32) {
    %c0_i32 = arith.constant 0 : i32
    %c0_i32_0 = arith.constant 0 : i32
    %c0_i32_1 = arith.constant 0 : i32
    return %c0_i32, %c0_i32_0 : i32, i32
  }
  func.func @transform_2(%arg0: i32) -> (i32, i32) {
    %c0_i32 = arith.constant 0 : i32
    %c0_i32_0 = arith.constant 0 : i32
    %c0_i32_1 = arith.constant 0 : i32
    return %c0_i32, %c0_i32_0 : i32, i32
  }
  func.func @transform_3(%arg0: i32) -> (i32, i32) {
    %c0_i32 = arith.constant 0 : i32
    %c0_i32_0 = arith.constant 0 : i32
    %c0_i32_1 = arith.constant 0 : i32
    return %c0_i32, %c0_i32_0 : i32, i32
  }
  func.func @transform_4(%arg0: i32) -> (i32, i32) {
    %c0_i32 = arith.constant 0 : i32
    %c0_i32_0 = arith.constant 0 : i32
    %c0_i32_1 = arith.constant 0 : i32
    return %c0_i32, %c0_i32_0 : i32, i32
  }
  func.func @transform_5(%arg0: i32) -> (i32, i32) {
    %c0_i32 = arith.constant 0 : i32
    %c0_i32_0 = arith.constant 0 : i32
    return %arg0, %c0_i32 : i32, i32
  }
}

</mosaic_0001>

<bundles_post_ra>
// kernel: tpu_custom_call.1
= control target key start
LH: loop header
LB: loop body
LE: loop exit
PB: predicated region body
PF: predicated region fallthrough
CT: control target
= control target key end

     0   :  { %10 = vsyncpa [#allocation3], 0  ;;  %s1849_s0 = inlined_call_operand.hbm [shape: f32[32,128], index: 0, kind: input, shape index: {}]   ;;  %s1850_s1 = inlined_call_operand.hbm [shape: bf16[384,128], index: 1, kind: input, shape index: {}]   ;;  %s1851_s2 = inlined_call_operand.vmem [shape: f32[1,128], index: 2, kind: input, shape index: {}]   ;;  %s1852_s3 = inlined_call_operand.hbm [shape: bf16[384,128], index: 3, kind: input, shape index: {}]   ;;  %s1853_s4 = inlined_call_operand.vmem [shape: f32[1,128], index: 4, kind: input, shape index: {}]   ;;  %s1854_s5 = inlined_call_operand.hbm [shape: f32[32,128], index: 5, kind: output, shape index: {}]  }
   0x1   :  { %12 = vsyncpa [#allocation3 + $0x1], 0 }
   0x2   :  { %13 = vsyncpa [#allocation6], 0 }
   0x3   :  { %14 = vsyncpa [#allocation4], 0 }
   0x4   :  { %16 = vsyncpa [#allocation4 + $0x1], 0  ;;  %s1531_s18 = smov 0   ;;  %s1533_s19 = smov 0  }
   0x5   :  { %s1535_s20 = smov 0   ;;  %s1537_s21 = smov 0  }
   0x6 LB: > { %s1552_s22 = sadd.s32 4294967295, %s1486_s21   ;;  %s1022_s23 = sadd.s32 4294967294, %s1486_s21   ;;  %s1486_s21 = sphi %s1537_s21, %s1878_s21   ;;  %s1482_s20 = sphi %s1535_s20, %s1877_s20   ;;  %s1478_s19 = sphi %s1533_s19, %s1876_s19   ;;  %s1474_s18 = sphi %s1531_s18, %s1875_s18  }
   0x7   : > { %p42_p0 = scmp.ne.s32.totalorder %s1478_s19, %s1474_s18  ;;  %p1855_p1 = scmp.eq.s32.totalorder %s1552_s22, 0 }
   0x8   : > { %p156_p3 = scmp.eq.s32.totalorder %s1022_s23, 1  ;;  %p1023_p5 = scmp.ge.s32.totalorder %s1486_s21, 1 }
   0x9   : > { %p1561_p4 = por %p1855_p1, %p42_p0  ;;  %p163_p7 = scmp.lt.s32.totalorder %s1486_s21, 3 }
   0xa   : > { %p1566_p6 = por %p156_p3, %p42_p0  ;;  %s1488_s27 = smov [#allocation5]  }
   0xb   : > { %s1858_s24 = scalar_select %p1561_p4, 1, 0 }
   0xc   : > { %s1859_s25 = scalar_select %p1566_p6, 1, 0 }
   0xd   : > { %p1571_p8 = pnand %p1023_p5, %p163_p7  ;;  %s175_s28 = sshll.u32 %s1488_s27, 4  ;;  %s1575_s28 = int_to_ptr.vmem [resolvable:$true] %s175_s28 }
   0xe   : > { %s1489_s30 = smov [#allocation7]   ;;  %s1330_s9 = scalar_lea.hbm %s1850_s1, 3072 }
   0xf   : > { %p1218_p9 = pneg %p1571_p8  ;;  %s191_s6 = sshll.u32 %s1489_s30, 4  ;;  %s1586_s6 = int_to_ptr.vmem [resolvable:$true] %s191_s6 }
  0x10   : > { %p1331_p12 = scmp.ne.s32.totalorder %s1850_s1, %s1330_s9  ;;  %p1337_p5 = scmp.lt.u32.totalorder %s1330_s9, %s1850_s1 }
  0x11   : > { %p1582_p11 = pnand %p1218_p9, %p1855_p1 }
  0x13   : > { %p1332_p13 = pneg %p1582_p11 }
  0x15   : > { %p1333_p0 = pnand %p1332_p13, %p1331_p12 }
  0x17   : > { %p1334_p3 = pneg %p1333_p0 }
  0x19   : > { %p1339_p7 = pnand %p1337_p5, %p1334_p3 }
  0x1b   : > { %1342 = shalt.err (!%p1339_p7)
}
  0x1c   : > { %s1343_s14 = scalar_lea.vmem %s1575_s28, 3072  ;;  %p1351_p2 = scmp.lt.s32.totalorder %s1575_s28, %s1575_s28 }
  0x1d   : > { %p1344_p9 = scmp.ne.s32.totalorder %s1575_s28, %s1343_s14  ;;  %p1352_p12 = scmp.lt.s32.totalorder %s1343_s14, %s1343_s14 }
  0x1f   : > { %p1346_p10 = pnand %p1344_p9, %p1332_p13  ;;  %p1353_p0 = por %p1352_p12, %p1351_p2 }
  0x21   : > { %p1347_p1 = pneg %p1346_p10 }
  0x23   : > { %p1354_p6 = pnand %p1353_p0, %p1347_p1 }
  0x25   : > { %1357 = shalt.err (!%p1354_p6)
}
  0x26   : > { %s1490_s15 = smov 64   ;;  %s1491_s16 = smov 4  }
  0x27   : > { %1221 = dma.hbm_to_vmem [thread:$0]  (!%p1582_p11), %s1850_s1, 3072, %s1575_s28, [#allocation6], %s1490_s15, %s1490_s15, %s1491_s16  }
  0x28   : > { %s1358_s7 = scalar_lea.hbm %s1852_s3, 3072 }
  0x29   : > { %p1359_p2 = scmp.ne.s32.totalorder %s1852_s3, %s1358_s7  ;;  %p1365_p10 = scmp.lt.u32.totalorder %s1358_s7, %s1852_s3 }
  0x2b   : > { %p1361_p1 = pnand %p1359_p2, %p1332_p13 }
  0x2d   : > { %p1362_p6 = pneg %p1361_p1 }
  0x2f   : > { %p1367_p3 = pnand %p1365_p10, %p1362_p6 }
  0x31   : > { %1370 = shalt.err (!%p1367_p3)
}
  0x32   : > { %s1371_s28 = scalar_lea.vmem %s1586_s6, 3072  ;;  %p1379_p12 = scmp.lt.s32.totalorder %s1586_s6, %s1586_s6 }
  0x33   : > { %p1372_p5 = scmp.ne.s32.totalorder %s1586_s6, %s1371_s28  ;;  %p1380_p0 = scmp.lt.s32.totalorder %s1371_s28, %s1371_s28 }
  0x35   : > { %p1374_p7 = pnand %p1372_p5, %p1332_p13  ;;  %p1381_p2 = por %p1380_p0, %p1379_p12 }
  0x37   : > { %p1375_p9 = pneg %p1374_p7 }
  0x39   : > { %p1382_p1 = pnand %p1381_p2, %p1375_p9 }
  0x3b   : > { %1385 = shalt.err (!%p1382_p1)
}
  0x3c   : > { %1224 = dma.hbm_to_vmem [thread:$0]  (!%p1582_p11), %s1852_s3, 3072, %s1586_s6, [#allocation6], %s1490_s15, %s1490_s15, %s1491_s16  }
  0x3d   : > { %s1641_s14 = sadd.s32 1, %s1486_s21   ;;  %s29_s29 = sadd.s32 1, %s1482_s20 }
  0x3e   : > { %s26_s17 = ssub.s32 %s1486_s21, %s1641_s14  ;;  %p36_p13 = scmp.ne.s32.totalorder %s1482_s20, %s1478_s19 }
  0x3f   : > { %p27_p6 = scmp.eq.s32.totalorder %s26_s17, 0  ;;  %p37_p10 = scmp.eq.s32.totalorder %s1486_s21, 0 }
  0x40   : > { %p1862_p3 = scmp.eq.s32.totalorder %s1552_s22, 1  ;;  %p1235_p7 = scmp.lt.s32.totalorder %s1486_s21, 2 }
  0x41   : > { %s1657_s27 = scalar_select %p27_p6, %s1482_s20, %s29_s29  }
  0x42   : > { %p1651_p5 = por %p1862_p3, %p36_p13  ;;  %p38_p9 = por %p37_p10, %p36_p13 }
  0x43   : > { %s208_s30 = sand.u32 1, %s1482_s20   ;;  %s1102_s6 = sshll.u32 %s1486_s21, 8 }
  0x44   : > { %s1863_s23 = scalar_select %p1651_p5, 1, 0 }
  0x45   : > { %s1027_s7 = sshll.u32 %s208_s30, 4  ;;  %s1664_s8 = scalar_lea.hbm %s1849_s0, %s1102_s6 }
  0x46   : > { %s212_s9 = scalar_lea.vmem [#allocation2], %s1027_s7  ;;  %p1668_p11 = pnand %p1235_p7, %p38_p9 }
  0x47   : > { %s219_s10 = sshll.u32 %s212_s9, 4  ;;  %s1672_s28 = scalar_lea.sflag [#allocation3], %s208_s30  ;;  %s1666_s10 = int_to_ptr.vmem [resolvable:$true] %s219_s10 }
  0x48   : > { %s1386_s12 = scalar_lea.hbm %s1664_s8, 256  ;;  %p1388_p0 = pneg %p1668_p11 }
  0x49   : > { %p1387_p12 = scmp.ne.s32.totalorder %s1664_s8, %s1386_s12  ;;  %s1391_s17 = scalar_lea.hbm %s1849_s0, 512 }
  0x4a   : > { %p1392_p13 = scmp.lt.u32.totalorder %s1664_s8, %s1849_s0  ;;  %p1393_p6 = scmp.lt.u32.totalorder %s1391_s17, %s1386_s12 }
  0x4b   : > { %p1389_p2 = pnand %p1388_p0, %p1387_p12  ;;  %p1395_p3 = scmp.lt.u32.totalorder %s1386_s12, %s1664_s8 }
  0x4c   : > { %p1394_p10 = por %p1393_p6, %p1392_p13 }
  0x4d   : > { %p1390_p1 = pneg %p1389_p2 }
  0x4e   : > { %p1396_p7 = por %p1395_p3, %p1394_p10 }
  0x50   : > { %p1397_p9 = pnand %p1396_p7, %p1390_p1 }
  0x52   : > { %1400 = shalt.err (!%p1397_p9)
}
  0x53   : > { %s1401_s30 = scalar_lea.vmem %s1666_s10, 256  ;;  %s1492_s15 = smov [#allocation2]  }
  0x54   : > { %p1402_p12 = scmp.ne.s32.totalorder %s1666_s10, %s1401_s30  ;;  %s1406_s16 = sshll.u32 %s1492_s15, 4  ;;  %s1407_s16 = int_to_ptr.vmem [resolvable:$false] %s1406_s16 }
  0x55   : > { %s1408_s9 = scalar_lea.vmem %s1407_s16, 512  ;;  %p1409_p4 = scmp.lt.s32.totalorder %s1666_s10, %s1407_s16 }
  0x56   : > { %p1404_p2 = pnand %p1402_p12, %p1388_p0  ;;  %p1410_p13 = scmp.lt.s32.totalorder %s1408_s9, %s1401_s30 }
  0x58   : > { %p1405_p5 = pneg %p1404_p2  ;;  %p1411_p6 = por %p1410_p13, %p1409_p4 }
  0x5a   : > { %p1412_p10 = pnand %p1411_p6, %p1405_p5 }
  0x5c   : > { %1415 = shalt.err (!%p1412_p10)
}
  0x5d   : > { %s1493_s12 = smov 128   ;;  %s1494_s13 = smov 8  }
  0x5e   : > { %1228 = dma.hbm_to_vmem [thread:$0]  (!%p1668_p11), %s1664_s8, 256, %s1666_s10, %s1672_s28, %s1493_s12, %s1493_s12, %s1494_s13  }
  0x5f   : > { %231 = sbr.rel (%p1571_p8) target bundleno = 606 (0x25e), region = 40  ;;  %s1703_s29 = sand.u32 (!%p1571_p8), 1, %s1478_s19  }
  0x60   : > { %s1031_s17 = sshll.u32 (!%p1571_p8), %s1703_s29, 4  ;;  %s234_s7 = scalar_lea.sflag (!%p1571_p8), [#allocation3], %s1703_s29 }
  0x61   : > { %s1709_s6 = scalar_lea.vmem (!%p1571_p8), [#allocation2], %s1031_s17  ;;  %p1865_p4 = scmp.ne.s32.totalorder (!%p1571_p8), %s1858_s24, 0 }
  0x66   : > { %1461 = dma.done.wait (%p1865_p4), %s234_s7, 256  }
  0x67   : > { %1463 = vsyncadd (%p1865_p4), %s234_s7, 4294967040  ;;  %p1866_p5 = scmp.eq.s32.totalorder %s1552_s22, 0 }
  0x69   : > { %1465 = dma.done.wait (%p1866_p5), [#allocation6], 6144   ;;  %p1867_p8 = pmov %p1866_p5 }
  0x6a   : > { %v1495_v0 = vmov 0.0   ;;  %vm1496_vm0 = vmmov 0   ;;  %v1282_v1 = vld [vmem:[#allocation5 + $0x40] sm:$0xff]   ;;  %v1285_v4 = vld [vmem:[#allocation5 + $0x48] sm:$0xff]   ;;  %v1288_v7 = vld [vmem:[#allocation5 + $0x50] sm:$0xff]   ;;  %v277_v12 = vlaneseq  ;;  %vm1497_vm4 = vmmov 1  }
  0x6b   : > { %1467 = vsyncadd (%p1867_p8), [#allocation6], 4294961152  ;;  %1166 = vmatprep.subr.bf16.mxu1 %v1495_v0  ;;  %1182 = vmatprep.mubr.msk.bf16.mxu1 %vm1496_vm0, %v1495_v0  ;;  %v1283_v2 = vld [vmem:[#allocation5] sm:$0xff]   ;;  %v1286_v5 = vld [vmem:[#allocation5 + $0x8] sm:$0xff]   ;;  %s271_s11 = scalar_lea.vmem [#allocation8], %s1031_s17  ;;  %s1103_s30 = sshll.u32 %s1552_s22, 8 }
  0x6c   : > { %1104 = vmatprep.subr.bf16.mxu0 %v1282_v1  ;;  %v1284_v3 = vld [vmem:[#allocation5 + $0x80] sm:$0xff]   ;;  %v1287_v6 = vld [vmem:[#allocation5 + $0x88] sm:$0xff]   ;;  %v1289_v8 = vld [vmem:[#allocation5 + $0x10] sm:$0xff]   ;;  %v1725_v16 = vshrl.u32 %v277_v12, 7  ;;  %s930_s28 = sshll.u32 %s271_s11, 4  ;;  %s1802_s9 = scalar_lea.hbm %s1854_s5, %s1103_s30  ;;  %s1804_s28 = int_to_ptr.vmem [resolvable:$true] %s930_s28 }
  0x6d   : > { %1105 = vmatpush3.bf16.msra.mxu0 %v1283_v2  ;;  %1167 = vmatpush3.bf16.msra.mxu1 %v1284_v3  ;;  %v1290_v9 = vld [vmem:[#allocation5 + $0x90] sm:$0xff]   ;;  %v1291_v10 = vld [vmem:[#allocation5 + $0x58] sm:$0xff]   ;;  %v1294_v14 = vld [vmem:[#allocation5 + $0x60] sm:$0xff]   ;;  %s917_s12 = scalar_lea.sflag [#allocation4], %s1703_s29  ;;  %s1416_s13 = scalar_lea.vmem %s1804_s28, 256 }
  0x6e   : > { %1106 = vmatprep.subr.bf16.mxu0 %v1285_v4  ;;  %1168 = vmatprep.subr.bf16.mxu1 %v1495_v0  ;;  %v1292_v11 = vld [vmem:[#allocation5 + $0x18] sm:$0xff]   ;;  %v1295_v15 = vld [vmem:[#allocation5 + $0x20] sm:$0xff]   ;;  %v1297_v18 = vld [vmem:[#allocation5 + $0x68] sm:$0xff]   ;;  %v279_v20 = vadd.s32 8, %v1725_v16  ;;  %v284_v22 = vand.u32 15, %v1725_v16  ;;  %vm310_vm2 = vcmp.lt.s32.totalorder %v1725_v16, 1  ;;  %p1417_p11 = scmp.ne.s32.totalorder %s1804_s28, %s1416_s13 }
  0x6f   : > { %v1293_v13 = vld [vmem:[#allocation5 + $0x98] sm:$0xff]   ;;  %v1296_v17 = vld [vmem:[#allocation5 + $0xa0] sm:$0xff]   ;;  %v1298_v19 = vld [vmem:[#allocation5 + $0x28] sm:$0xff]   ;;  %vm321_vm3 = vcmp.lt.s32.totalorder %v1725_v16, 7  ;;  %p1872_p0 = scmp.ne.s32.totalorder %s1863_s23, 0  ;;  %s1498_s22 = smov [#allocation8]  }
  0x70   : > { %v1299_v21 = vld [vmem:[#allocation5 + $0xa8] sm:$0xff]   ;;  %v1300_v23 = vld [vmem:[#allocation5 + $0x70] sm:$0xff]   ;;  %v1303_v26 = vld [vmem:[#allocation5 + $0x78] sm:$0xff]   ;;  %v291_v27 = vand.u32 15, %v279_v20  ;;  %vm304_vm1 = vcmp.ne.s32.totalorder %v284_v22, 0  ;;  %s1420_s17 = sshll.u32 %s1498_s22, 4  ;;  %s1421_s17 = int_to_ptr.vmem [resolvable:$false] %s1420_s17 }
  0x71   : > { %1107 = vmatpush3.bf16.msra.mxu0 %v1286_v5  ;;  %1169 = vmatpush3.bf16.msra.mxu1 %v1287_v6  ;;  %v1301_v24 = vld [vmem:[#allocation5 + $0x30] sm:$0xff]   ;;  %v1735_v29 = vld [vmem:[%s1709_s6 + $0x8] sm:$0xff]  ;;  %vm1746_vm5 = vmpackc.low %vm1497_vm4, %vm304_vm1  ;;  %p1418_p1 = pnand %p1417_p11, %p1872_p0  ;;  %s1422_s7 = scalar_lea.vmem %s1421_s17, 512 }
  0x72   : > { %1108 = vmatprep.subr.bf16.mxu0 %v1288_v7  ;;  %1170 = vmatprep.subr.bf16.mxu1 %v1495_v0  ;;  %v1302_v25 = vld [vmem:[#allocation5 + $0xb0] sm:$0xff]   ;;  %v309_v31 = vrot.slane %v1735_v29, 7  ;;  %v320_v33 = vrot.slane %v1735_v29, 1  ;;  %v1304_v34 = vld [vmem:[#allocation5 + $0x38] sm:$0xff]   ;;  %vm307_vm6 = vcmp.ne.s32.totalorder %v291_v27, 15  ;;  %v1306_v42 = vld [vmem:[#allocation7 + $0x40] sm:$0xff]   ;;  %p1423_p7 = scmp.lt.s32.totalorder %s1804_s28, %s1421_s17  ;;  %p1424_p9 = scmp.lt.s32.totalorder %s1422_s7, %s1416_s13 }
  0x73   : > { %v1732_v28 = vld [vmem:[%s1709_s6] sm:$0xff]  ;;  %v1305_v37 = vld [vmem:[#allocation5 + $0xb8] sm:$0xff]   ;;  %vm1759_vm7 = vmpackc.low %vm307_vm6, %vm1497_vm4  ;;  %p1419_p3 = pneg %p1418_p1 }
  0x74   : > { %v308_v30 = vrot.slane %v1732_v28, 7  ;;  %v319_v32 = vrot.slane %v1732_v28, 1  ;;  %v331_v35 = vpack.c.bf16 %v1735_v29, %v1732_v28  ;;  %v1307_v45 = vld [vmem:[#allocation7] sm:$0xff]   ;;  %v1309_v48 = vld [vmem:[#allocation7 + $0x48] sm:$0xff]   ;;  %v1312_v51 = vld [vmem:[#allocation7 + $0x50] sm:$0xff]   ;;  %p1425_p12 = por %p1424_p9, %p1423_p7 }
  0x75   : > { %1109 = vmatpush3.bf16.msra.mxu0 %v1289_v8  ;;  %1171 = vmatpush3.bf16.msra.mxu1 %v1290_v9  ;;  %v1308_v47 = vld [vmem:[#allocation7 + $0x80] sm:$0xff]   ;;  %v1310_v49 = vld [vmem:[#allocation7 + $0x8] sm:$0xff]   ;;  %v1313_v52 = vld [vmem:[#allocation7 + $0x10] sm:$0xff]  }
  0x76   : > { %1110 = vmatprep.subr.bf16.mxu0 %v1291_v10  ;;  %1172 = vmatprep.subr.bf16.mxu1 %v1495_v0  ;;  %v311_v38 = vsel %vm310_vm2, %v308_v30, %v309_v31  ;;  %v312_v39 = vsel %vm310_vm2, %v309_v31, %v308_v30  ;;  %v322_v40 = vsel %vm321_vm3, %v319_v32, %v320_v33  ;;  %v1311_v50 = vld [vmem:[#allocation7 + $0x88] sm:$0xff]   ;;  %v1314_v53 = vld [vmem:[#allocation7 + $0x90] sm:$0xff]   ;;  %v1315_v54 = vld [vmem:[#allocation7 + $0x58] sm:$0xff]   ;;  %p1426_p2 = pnand %p1425_p12, %p1419_p3 }
  0x77   : > { %564 = vmatprep.mubr.bf16.mxu0 %v331_v35  ;;  %v323_v41 = vsel %vm321_vm3, %v320_v33, %v319_v32  ;;  %v1061_v44 = vpack.c.bf16 %v311_v38, %v312_v39  ;;  %v1316_v55 = vld [vmem:[#allocation7 + $0x18] sm:$0xff]   ;;  %v1318_v57 = vld [vmem:[#allocation7 + $0x60] sm:$0xff]   ;;  %v1321_v60 = vld [vmem:[#allocation7 + $0x68] sm:$0xff]  }
  0x78   : > { %v1064_v46 = vpack.c.bf16 %v323_v41, %v322_v40  ;;  %v1317_v56 = vld [vmem:[#allocation7 + $0x98] sm:$0xff]   ;;  %v1319_v58 = vld [vmem:[#allocation7 + $0x20] sm:$0xff]   ;;  %v1322_v61 = vld [vmem:[#allocation7 + $0x28] sm:$0xff]  }
  0x79   : > { %1111 = vmatpush3.bf16.msra.mxu0 %v1292_v11  ;;  %1173 = vmatpush3.bf16.msra.mxu1 %v1293_v13  ;;  %v1320_v59 = vld [vmem:[#allocation7 + $0xa0] sm:$0xff]   ;;  %v1323_v62 = vld [vmem:[#allocation7 + $0xa8] sm:$0xff]   ;;  %v1324_v63 = vld [vmem:[#allocation7 + $0x70] sm:$0xff]  }
  0x7a   : > { %1112 = vmatprep.subr.bf16.mxu0 %v1294_v14  ;;  %1174 = vmatprep.subr.bf16.mxu1 %v1495_v0  ;;  %v1325_v1 = vld [vmem:[#allocation7 + $0x30] sm:$0xff]   ;;  %v1327_v3 = vld [vmem:[#allocation7 + $0x78] sm:$0xff]   ;;  %v1035_v8 = vld [vmem:[%s1851_s2] ss:$0 sm:$0xff] }
  0x7b   : > { %v1326_v2 = vld [vmem:[#allocation7 + $0xb0] sm:$0xff]   ;;  %v1328_v4 = vld [vmem:[#allocation7 + $0x38] sm:$0xff]   ;;  %v1066_v39 = vld [vmem:[%s1853_s4] ss:$0 sm:$0xff] }
  0x7c   : > { %v1329_v5 = vld [vmem:[#allocation7 + $0xb8] sm:$0xff]  }
  0x7d   : > { %1113 = vmatpush3.bf16.msra.mxu0 %v1295_v15  ;;  %1175 = vmatpush3.bf16.msra.mxu1 %v1296_v17 }
  0x7e   : > { %1114 = vmatprep.subr.bf16.mxu0 %v1297_v18  ;;  %1176 = vmatprep.subr.bf16.mxu1 %v1495_v0 }
  0x81   : > { %1115 = vmatpush3.bf16.msra.mxu0 %v1298_v19  ;;  %1177 = vmatpush3.bf16.msra.mxu1 %v1299_v21 }
  0x82   : > { %1116 = vmatprep.subr.bf16.mxu0 %v1300_v23  ;;  %1178 = vmatprep.subr.bf16.mxu1 %v1495_v0 }
  0x85   : > { %1117 = vmatpush3.bf16.msra.mxu0 %v1301_v24  ;;  %1179 = vmatpush3.bf16.msra.mxu1 %v1302_v25 }
  0x86   : > { %1118 = vmatprep.subr.bf16.mxu0 %v1303_v26  ;;  %1180 = vmatprep.subr.bf16.mxu1 %v1495_v0 }
  0x89   : > { %1119 = vmatpush3.bf16.msra.mxu0 %v1304_v34  ;;  %1181 = vmatpush3.bf16.msra.mxu1 %v1305_v37 }
  0x8a   : > { %1135 = vmatprep.subr.bf16.mxu0 %v1306_v42  ;;  %1186 = vmatprep.subr.bf16.mxu1 %v1495_v0 }
  0x8c   : > { %1062 = vmatmul.mubr.msk.bf16.vlgmr.msra.gmra.mrb[0].mxu0 %vm1746_vm5, %v1061_v44  ;;  %1183 = vmatmul.mubr.msk.bf16.vlgmr.msra.gmra.mrb[0].mxu1 %vm1759_vm7, %v1064_v46 }
  0x8d   : > { %1136 = vmatpush3.bf16.msra.mxu0 %v1307_v45  ;;  %1187 = vmatpush3.bf16.msra.mxu1 %v1308_v47 }
  0x8e   : > { %1137 = vmatprep.subr.bf16.mxu0 %v1309_v48  ;;  %1188 = vmatprep.subr.bf16.mxu1 %v1495_v0 }
  0x8f   : > { %1202 = vmatprep.mubr.msk.bf16.mxu1 %vm1496_vm0, %v1495_v0 }
  0x91   : > { %1138 = vmatpush3.bf16.msra.mxu0 %v1310_v49  ;;  %1189 = vmatpush3.bf16.msra.mxu1 %v1311_v50 }
  0x92   : > { %1139 = vmatprep.subr.bf16.mxu0 %v1312_v51  ;;  %1190 = vmatprep.subr.bf16.mxu1 %v1495_v0 }
  0x95   : > { %1140 = vmatpush3.bf16.msra.mxu0 %v1313_v52  ;;  %1191 = vmatpush3.bf16.msra.mxu1 %v1314_v53 }
  0x96   : > { %1141 = vmatprep.subr.bf16.mxu0 %v1315_v54  ;;  %1192 = vmatprep.subr.bf16.mxu1 %v1495_v0 }
  0x99   : > { %1142 = vmatpush3.bf16.msra.mxu0 %v1316_v55  ;;  %1193 = vmatpush3.bf16.msra.mxu1 %v1317_v56 }
  0x9a   : > { %1194 = vmatprep.subr.bf16.mxu1 %v1495_v0  ;;  %1143 = vmatprep.subr.bf16.mxu0 %v1318_v57 }
  0x9d   : > { %1144 = vmatpush3.bf16.msra.mxu0 %v1319_v58  ;;  %1195 = vmatpush3.bf16.msra.mxu1 %v1320_v59 }
  0x9e   : > { %1196 = vmatprep.subr.bf16.mxu1 %v1495_v0  ;;  %1145 = vmatprep.subr.bf16.mxu0 %v1321_v60 }
  0xa1   : > { %1146 = vmatpush3.bf16.msra.mxu0 %v1322_v61  ;;  %1197 = vmatpush3.bf16.msra.mxu1 %v1323_v62 }
  0xa2   : > { %1198 = vmatprep.subr.bf16.mxu1 %v1495_v0  ;;  %1147 = vmatprep.subr.bf16.mxu0 %v1324_v63 }
  0xa5   : > { %1148 = vmatpush3.bf16.msra.mxu0 %v1325_v1  ;;  %1199 = vmatpush3.bf16.msra.mxu1 %v1326_v2 }
  0xa6   : > { %1200 = vmatprep.subr.bf16.mxu1 %v1495_v0  ;;  %1149 = vmatprep.subr.bf16.mxu0 %v1327_v3 }
  0xa9   : > { %1150 = vmatpush3.bf16.msra.mxu0 %v1328_v4  ;;  %1201 = vmatpush3.bf16.msra.mxu1 %v1329_v5 }
 0x15f   : > { %v1120_v6 = vpop.f32.mrb[0].mxu0  ;;  %v607_v9 = vpop.f32.mrb[0].mxu1 }
 0x160   : > { %v1121_v7 = vpop.f32.mrb[1].mxu0  ;;  %v1184_v12 = vpop.f32.mrb[1].mxu1 }
 0x161   : > { %v1122_v10 = vadd.f32 %v1121_v7, %v1120_v6  ;;  %v1123_v11 = vpop.f32.mrb[2].mxu0  ;;  %v610_v14 = vpop.f32.mrb[2].mxu1 }
 0x162   : > { %v1124_v13 = vpop.f32.mrb[3].mxu0  ;;  %v1185_v0 = vpop.f32.mrb[3].mxu1 }
 0x163   : > { %v567_v15 = vadd.f32 %v1122_v10, %v1035_v8  ;;  %v1125_v17 = vadd.f32 %v1124_v13, %v1123_v11 }
 0x165   : > { %v608_v18 = vadd.f32 %v607_v9, %v567_v15  ;;  %v570_v19 = vadd.f32 %v1125_v17, %v1035_v8 }
 0x167   : > { %v614_v20 = vmax.f32 %v608_v18, 0.0  ;;  %v611_v21 = vadd.f32 %v610_v14, %v570_v19 }
 0x169   : > { %v615_v22 = vmax.f32 %v611_v21, 0.0  ;;  %v616_v23 = vrot.slane %v614_v20, 7  ;;  %v622_v24 = vrot.slane %v614_v20, 1 }
 0x16b   : > { %v617_v25 = vrot.slane %v615_v22, 7  ;;  %v623_v26 = vrot.slane %v615_v22, 1  ;;  %v629_v27 = vpack.c.bf16 %v615_v22, %v614_v20 }
 0x16d   : > { %v618_v30 = vsel %vm310_vm2, %v616_v23, %v617_v25  ;;  %v619_v31 = vsel %vm310_vm2, %v617_v25, %v616_v23  ;;  %v624_v32 = vsel %vm321_vm3, %v622_v24, %v623_v26  ;;  %v625_v33 = vsel %vm321_vm3, %v623_v26, %v622_v24  ;;  %862 = vmatprep.mubr.bf16.mxu0 %v629_v27 }
 0x16e   : > { %v1092_v34 = vpack.c.bf16 %v618_v30, %v619_v31  ;;  %v1095_v35 = vpack.c.bf16 %v625_v33, %v624_v32 }
 0x170   : > { %1093 = vmatmul.mubr.msk.bf16.vlgmr.msra.gmra.mrb[4].mxu0 %vm1746_vm5, %v1092_v34  ;;  %1203 = vmatmul.mubr.msk.bf16.vlgmr.msra.gmra.mrb[4].mxu1 %vm1759_vm7, %v1095_v35 }
 0x243   : > { %v1151_v37 = vpop.f32.mrb[4].mxu0  ;;  %v905_v38 = vpop.f32.mrb[4].mxu1 }
 0x244   : > { %v1152_v40 = vpop.f32.mrb[5].mxu0  ;;  %v1204_v16 = vpop.f32.mrb[5].mxu1 }
 0x245   : > { %v1153_v41 = vadd.f32 %v1152_v40, %v1151_v37  ;;  %v1154_v42 = vpop.f32.mrb[6].mxu0  ;;  %v908_v44 = vpop.f32.mrb[6].mxu1 }
 0x246   : > { %v1155_v45 = vpop.f32.mrb[7].mxu0  ;;  %v1205_v36 = vpop.f32.mrb[7].mxu1 }
 0x247   : > { %v865_v46 = vadd.f32 %v1153_v41, %v1066_v39  ;;  %v1156_v47 = vadd.f32 %v1155_v45, %v1154_v42 }
 0x249   : > { %v906_v43 = vadd.f32 %v905_v38, %v865_v46  ;;  %v868_v48 = vadd.f32 %v1156_v47, %v1066_v39 }
 0x24b   : > { %v912_v49 = vadd.f32 %v906_v43, %v1732_v28  ;;  %v909_v50 = vadd.f32 %v908_v44, %v868_v48 }
 0x24d   : > { %914 = vst [vmem:[%s271_s11] sm:$0xff] %v912_v49  ;;  %v913_v51 = vadd.f32 %v909_v50, %v1735_v29 }
 0x24f   : > { %915 = vst [vmem:[%s271_s11 + $0x8] sm:$0xff] %v913_v51 }
 0x250   : > { %1429 = shalt.err (!%p1426_p2)
}
 0x251   : > { %s1430_s6 = scalar_lea.hbm %s1802_s9, 256  ;;  %s1434_s8 = scalar_lea.hbm %s1854_s5, 512 }
 0x252   : > { %p1431_p13 = scmp.ne.s32.totalorder %s1802_s9, %s1430_s6  ;;  %p1435_p4 = scmp.lt.u32.totalorder %s1802_s9, %s1854_s5 }
 0x253   : > { %p1436_p5 = scmp.lt.u32.totalorder %s1434_s8, %s1430_s6  ;;  %p1438_p11 = scmp.lt.u32.totalorder %s1430_s6, %s1802_s9 }
 0x254   : > { %p1432_p6 = pnand %p1431_p13, %p1872_p0 }
 0x255   : > { %p1437_p8 = por %p1436_p5, %p1435_p4 }
 0x256   : > { %p1433_p10 = pneg %p1432_p6 }
 0x257   : > { %p1439_p1 = por %p1438_p11, %p1437_p8 }
 0x259   : > { %p1440_p3 = pnand %p1439_p1, %p1433_p10 }
 0x25b   : > { %1443 = shalt.err (!%p1440_p3)
}
 0x25c   : > { %s1499_s30 = smov 128   ;;  %s1500_s15 = smov 8  }
 0x25d   : > { %1216 = dma.vmem_to_hbm [thread:$0]  (%p1872_p0), %s1804_s28, 256, %s1802_s9, %s917_s12, %s1499_s30, %s1499_s30, %s1500_s15  }
 0x25e PF: > { %s945_s16 = sand.u32 1, %s1474_s18   ;;  %p1873_p7 = scmp.ne.s32.totalorder %s1859_s25, 0 }
 0x25f   : > { %p1874_p9 = scmp.ge.s32.totalorder %s1486_s21, 2  ;;  %s946_s13 = scalar_lea.sflag [#allocation4], %s945_s16 }
 0x261   : > { %p1230_p12 = pnand %p1874_p9, %p1873_p7 }
 0x263   : > { %1469 = dma.done.wait (!%p1230_p12), %s946_s13, 256  }
 0x264   : > { %1471 = vsyncadd (!%p1230_p12), %s946_s13, 4294967040  ;;  %p19_p2 = scmp.ge.s32.totalorder %s1641_s14, 4   ;;  %s1875_s18 = smov %s1478_s19 }
 0x265   : > { %s1876_s19 = smov %s1482_s20  ;;  %s1877_s20 = smov %s1657_s27 }
 0x266   : > { %s1878_s21 = smov %s1641_s14  ;;  %21 = sbr.rel (!%p19_p2) target bundleno = 6 (0x6), region = 93 }
 0x26d   :  { %951 = vsyncpa [#allocation3], 1 }
 0x26e   :  { %953 = vsyncpa [#allocation3 + $0x1], 1 }
 0x26f   :  { %954 = vsyncpa [#allocation6], 1 }
 0x270   :  { %955 = vsyncpa [#allocation4], 1 }
 0x271   :  { %957 = vsyncpa [#allocation4 + $0x1], 1 }

</bundles_post_ra>
